<compile_context>
chip_gen: v6e
topology: v6e:2x2x1
jax: 0.10.0
libtpu: 0.0.40
codegen_flags: <defaults>
</compile_context>

<pallas_src>
import math

import jax
import jax.numpy as jnp
from jax.experimental import pallas as pl
from jax.experimental.pallas import tpu as pltpu

EPS = 1e-5


def make_kernel(K, DIL, LEFT, NL):
    """Fused residual-block kernel for static shape constants."""
    inv_n = 1.0 / float(NL)

    def kernel(x_ref, m_ref, g1_ref, be1_ref, w1_ref, b1_ref,
               g2_ref, be2_ref, w2_ref, b2_ref, o_ref):
        x = x_ref[...]                                   # (C, N*L), length on lanes

        # --- BatchNorm1d #1 (training-mode batch stats, single pass) + ReLU ---
        s1 = jnp.sum(x, axis=1, keepdims=True)           # (C, 1)
        q1 = jnp.sum(x * x, axis=1, keepdims=True)
        mu1 = s1 * inv_n
        var1 = q1 * inv_n - mu1 * mu1
        a = (x - mu1) * jax.lax.rsqrt(var1 + EPS) * g1_ref[...] + be1_ref[...]
        a = jnp.maximum(a, 0.0)

        # --- im2col: K shifted (and boundary-masked) views along channels ---
        masks = m_ref[...]                               # (K, N*L) validity masks
        views = []
        for k in range(K):                               # K is tiny & static
            s = k * DIL - LEFT                           # tap offset in length
            if s == 0:
                views.append(a)
            else:
                # views[k][c, p] = a[c, p + s] where the tap stays inside its
                # own sequence, else 0 ('same' zero padding). Mask kills both
                # the padding region and any cross-batch wrap from the roll.
                views.append(jnp.roll(a, -s, axis=1) * masks[k:k + 1, :])
        a_cat = jnp.concatenate(views, axis=0)           # (K*C, N*L)

        # --- dilated Conv1d(C -> CB) as ONE MXU matmul + bias ---
        h = jnp.dot(w1_ref[...], a_cat,
                    preferred_element_type=jnp.float32) + b1_ref[...]   # (CB, N*L)
        # NOTE: for realistic C/CB (>=128) cast the matmul operands to bf16 on
        # v6e/v7x (keep BN math in f32); at C=8 it is not worth the numerics.

        # --- BatchNorm1d #2 (single pass) + ReLU ---
        s2 = jnp.sum(h, axis=1, keepdims=True)
        q2 = jnp.sum(h * h, axis=1, keepdims=True)
        mu2 = s2 * inv_n
        var2 = q2 * inv_n - mu2 * mu2
        b = (h - mu2) * jax.lax.rsqrt(var2 + EPS) * g2_ref[...] + be2_ref[...]
        b = jnp.maximum(b, 0.0)

        # --- 1x1 Conv1d(CB -> C) + residual add (lane-dense store) ---
        y = jnp.dot(w2_ref[...], b,
                    preferred_element_type=jnp.float32) + b2_ref[...]   # (C, N*L)
        o_ref[...] = (x + y).astype(o_ref.dtype)

    return kernel


def residual_layer_1d(x_ncl, params, *, kernel_size, dilation):
    N, C, L = x_ncl.shape
    CB = params["w1"].shape[0]
    K = kernel_size
    DIL = dilation
    total_pad = DIL * (K - 1)
    LEFT = total_pad // 2                     # PyTorch 'same' left pad
    NL = N * L

    # Layout glue (outside the kernel): channels-major, length on lanes.
    x2 = jnp.transpose(x_ncl, (1, 0, 2)).reshape(C, NL).astype(jnp.float32)

    # Per-tap validity masks over the flattened length axis: position p belongs
    # to sequence index l = p % L; tap k reads l + k*DIL - LEFT, valid iff in [0, L).
    pos = jnp.arange(NL, dtype=jnp.int32) % L
    mask_rows = []
    for k in range(K):
        s = k * DIL - LEFT
        valid = (pos + s >= 0) & (pos + s < L)
        mask_rows.append(valid.astype(jnp.float32))
    masks = jnp.stack(mask_rows, axis=0)                          # (K, NL)

    # Weight re-arrangement: torch (O, I, K) -> im2col (O, K*I) matching the
    # channel order of the concatenated views (index = k*C + c).
    w1cat = jnp.transpose(params["w1"], (0, 2, 1)).reshape(CB, K * C)
    b1 = params["b1"].reshape(CB, 1)
    w2m = params["w2"][:, :, 0]                                   # (C, CB)
    b2 = params["b2"].reshape(C, 1)
    g1 = params["g1"].reshape(C, 1)
    be1 = params["be1"].reshape(C, 1)
    g2 = params["g2"].reshape(CB, 1)
    be2 = params["be2"].reshape(CB, 1)

    out2 = pl.pallas_call(
        make_kernel(K, DIL, LEFT, NL),
        out_shape=jax.ShapeDtypeStruct((C, NL), jnp.float32),
        # grid=() -> whole arrays live single-buffered in VMEM (no pipelining
        # to double-buffer); explicit limit keeps this safe on v7x (64 MiB).
        compiler_params=pltpu.CompilerParams(vmem_limit_bytes=32 * 1024 * 1024),
    )(x2, masks, g1, be1, w1cat, b1, g2, be2, w2m, b2)

    return jnp.transpose(out2.reshape(C, N, L), (1, 0, 2)).astype(x_ncl.dtype)


def ref_forward(x, p, *, kernel_size, dilation):
    """Pure-JAX reference (channels-first, like PyTorch)."""
    def bn(z, g, b):
        mu = jnp.mean(z, axis=(0, 2), keepdims=True)
        var = jnp.mean((z - mu) ** 2, axis=(0, 2), keepdims=True)
        return (z - mu) * jax.lax.rsqrt(var + EPS) * g[None, :, None] + b[None, :, None]

    total = dilation * (kernel_size - 1)
    left = total // 2
    right = total - left

    a = jax.nn.relu(bn(x, p["g1"], p["be1"]))
    h = jax.lax.conv_general_dilated(
        a, p["w1"], (1,), [(left, right)], rhs_dilation=(dilation,),
        dimension_numbers=("NCH", "OIH", "NCH"))
    h = h + p["b1"][None, :, None]
    b_ = jax.nn.relu(bn(h, p["g2"], p["be2"]))
    y = jax.lax.conv_general_dilated(
        b_, p["w2"], (1,), [(0, 0)], dimension_numbers=("NCH", "OIH", "NCH"))
    y = y + p["b2"][None, :, None]
    return x + y


if __name__ == "__main__":
    # Module hyper-parameters (small, consistent with the module's forward).
    dilation = 2
    resnet_bottleneck_factor = 0.5
    filters = 8
    kernel_size = 3
    num_bottleneck = math.floor(resnet_bottleneck_factor * filters)  # 4

    N, L = 2, 16

    key = jax.random.PRNGKey(0)
    kx, k1, k2, k3, k4 = jax.random.split(key, 5)

    x = jax.random.normal(kx, (N, filters, L), jnp.float32)          # (N, C, L)

    params = {
        # BatchNorm1d affine params (PyTorch init: gamma=1, beta=0).
        "g1": jnp.ones((filters,), jnp.float32),
        "be1": jnp.zeros((filters,), jnp.float32),
        "g2": jnp.ones((num_bottleneck,), jnp.float32),
        "be2": jnp.zeros((num_bottleneck,), jnp.float32),
        # Conv1d(filters -> bottleneck, K, dilation) weight/bias, torch layout (O, I, K).
        "w1": jax.random.normal(k1, (num_bottleneck, filters, kernel_size), jnp.float32) * 0.2,
        "b1": jax.random.normal(k2, (num_bottleneck,), jnp.float32) * 0.1,
        # Conv1d(bottleneck -> filters, 1) weight/bias, torch layout (O, I, 1).
        "w2": jax.random.normal(k3, (filters, num_bottleneck, 1), jnp.float32) * 0.2,
        "b2": jax.random.normal(k4, (filters,), jnp.float32) * 0.1,
    }

    out = residual_layer_1d(x, params, kernel_size=kernel_size, dilation=dilation)
    out = jax.block_until_ready(out)

    ref = jax.block_until_ready(
        ref_forward(x, params, kernel_size=kernel_size, dilation=dilation))

    assert out.shape == x.shape and out.dtype == x.dtype
    assert jnp.allclose(out, ref, atol=1e-4, rtol=1e-4), (
        f"max abs err {jnp.max(jnp.abs(out - ref))}")

    print("KERNEL_OK")
</pallas_src>

<mosaic_0001>
module attributes {stable_mosaic.version = 11 : i64} {
  func.func @kernel(%arg0: memref<8x32xf32, #tpu.memory_space<vmem>>, %arg1: memref<3x32xf32, #tpu.memory_space<vmem>>, %arg2: memref<8x1xf32, #tpu.memory_space<vmem>>, %arg3: memref<8x1xf32, #tpu.memory_space<vmem>>, %arg4: memref<4x24xf32, #tpu.memory_space<vmem>>, %arg5: memref<4x1xf32, #tpu.memory_space<vmem>>, %arg6: memref<4x1xf32, #tpu.memory_space<vmem>>, %arg7: memref<4x1xf32, #tpu.memory_space<vmem>>, %arg8: memref<8x4xf32, #tpu.memory_space<vmem>>, %arg9: memref<8x1xf32, #tpu.memory_space<vmem>>, %arg10: memref<8x32xf32, #tpu.memory_space<vmem>>) attributes {dimension_semantics = [], scalar_prefetch = 0 : i64, scratch_operands = 0 : i64, tpu.core_type = #tpu.core_type<tc>} {
    %c0 = arith.constant 0 : index
    %c0_0 = arith.constant 0 : index
    %0 = vector.load %arg0[%c0, %c0_0] : memref<8x32xf32, #tpu.memory_space<vmem>>, vector<8x32xf32>
    %cst = arith.constant dense<0.000000e+00> : vector<8xf32>
    %1 = vector.multi_reduction <add>, %0, %cst [1] : vector<8x32xf32> to vector<8xf32>
    %2 = vector.shape_cast %1 : vector<8xf32> to vector<8x1xf32>
    %3 = arith.mulf %0, %0 : vector<8x32xf32>
    %cst_1 = arith.constant dense<0.000000e+00> : vector<8xf32>
    %4 = vector.multi_reduction <add>, %3, %cst_1 [1] : vector<8x32xf32> to vector<8xf32>
    %5 = vector.shape_cast %4 : vector<8xf32> to vector<8x1xf32>
    %cst_2 = arith.constant 3.125000e-02 : f32
    %6 = vector.broadcast %cst_2 : f32 to vector<8x1xf32>
    %7 = arith.mulf %2, %6 : vector<8x1xf32>
    %cst_3 = arith.constant 3.125000e-02 : f32
    %8 = vector.broadcast %cst_3 : f32 to vector<8x1xf32>
    %9 = arith.mulf %5, %8 : vector<8x1xf32>
    %10 = arith.mulf %7, %7 : vector<8x1xf32>
    %11 = arith.subf %9, %10 : vector<8x1xf32>
    %12 = vector.broadcast %7 : vector<8x1xf32> to vector<8x32xf32>
    %13 = arith.subf %0, %12 : vector<8x32xf32>
    %cst_4 = arith.constant 9.99999974E-6 : f32
    %14 = vector.broadcast %cst_4 : f32 to vector<8x1xf32>
    %15 = arith.addf %11, %14 : vector<8x1xf32>
    %16 = math.rsqrt %15 : vector<8x1xf32>
    %17 = vector.broadcast %16 : vector<8x1xf32> to vector<8x32xf32>
    %18 = arith.mulf %13, %17 : vector<8x32xf32>
    %c0_5 = arith.constant 0 : index
    %c0_6 = arith.constant 0 : index
    %19 = vector.load %arg2[%c0_5, %c0_6] : memref<8x1xf32, #tpu.memory_space<vmem>>, vector<8x1xf32>
    %20 = vector.broadcast %19 : vector<8x1xf32> to vector<8x32xf32>
    %21 = arith.mulf %18, %20 : vector<8x32xf32>
    %c0_7 = arith.constant 0 : index
    %c0_8 = arith.constant 0 : index
    %22 = vector.load %arg3[%c0_7, %c0_8] : memref<8x1xf32, #tpu.memory_space<vmem>>, vector<8x1xf32>
    %23 = vector.broadcast %22 : vector<8x1xf32> to vector<8x32xf32>
    %24 = arith.addf %21, %23 : vector<8x32xf32>
    %cst_9 = arith.constant 0.000000e+00 : f32
    %25 = vector.broadcast %cst_9 : f32 to vector<8x32xf32>
    %26 = arith.maximumf %24, %25 : vector<8x32xf32>
    %c0_10 = arith.constant 0 : index
    %c0_11 = arith.constant 0 : index
    %27 = vector.load %arg1[%c0_10, %c0_11] : memref<3x32xf32, #tpu.memory_space<vmem>>, vector<3x32xf32>
    %28 = vector.extract_strided_slice %26 {offsets = [0, 30], sizes = [8, 2], strides = [1, 1]} : vector<8x32xf32> to vector<8x2xf32>
    %29 = vector.extract_strided_slice %26 {offsets = [0, 0], sizes = [8, 30], strides = [1, 1]} : vector<8x32xf32> to vector<8x30xf32>
    %30 = tpu.concatenate %28, %29 in 1 : vector<8x2xf32>, vector<8x30xf32> -> vector<8x32xf32>
    %31 = vector.extract_strided_slice %27 {offsets = [0, 0], sizes = [1, 32], strides = [1, 1]} : vector<3x32xf32> to vector<1x32xf32>
    %32 = vector.broadcast %31 : vector<1x32xf32> to vector<8x32xf32>
    %33 = arith.mulf %30, %32 : vector<8x32xf32>
    %34 = vector.extract_strided_slice %26 {offsets = [0, 2], sizes = [8, 30], strides = [1, 1]} : vector<8x32xf32> to vector<8x30xf32>
    %35 = vector.extract_strided_slice %26 {offsets = [0, 0], sizes = [8, 2], strides = [1, 1]} : vector<8x32xf32> to vector<8x2xf32>
    %36 = tpu.concatenate %34, %35 in 1 : vector<8x30xf32>, vector<8x2xf32> -> vector<8x32xf32>
    %37 = vector.extract_strided_slice %27 {offsets = [2, 0], sizes = [1, 32], strides = [1, 1]} : vector<3x32xf32> to vector<1x32xf32>
    %38 = vector.broadcast %37 : vector<1x32xf32> to vector<8x32xf32>
    %39 = arith.mulf %36, %38 : vector<8x32xf32>
    %40 = tpu.concatenate %33, %26, %39 in 0 : vector<8x32xf32>, vector<8x32xf32>, vector<8x32xf32> -> vector<24x32xf32>
    %c0_12 = arith.constant 0 : index
    %c0_13 = arith.constant 0 : index
    %41 = vector.load %arg4[%c0_12, %c0_13] : memref<4x24xf32, #tpu.memory_space<vmem>>, vector<4x24xf32>
    %cst_14 = arith.constant dense<0.000000e+00> : vector<4x32xf32>
    %42 = tpu.matmul %41, %40, %cst_14 {dimension_numbers = #tpu.dot_dimension_numbers<[1], [0], [0], [1], [0, 0, 1, 1], [], []>} : vector<4x24xf32>, vector<24x32xf32>, vector<4x32xf32> -> vector<4x32xf32>
    %c0_15 = arith.constant 0 : index
    %c0_16 = arith.constant 0 : index
    %43 = vector.load %arg5[%c0_15, %c0_16] : memref<4x1xf32, #tpu.memory_space<vmem>>, vector<4x1xf32>
    %44 = vector.broadcast %43 : vector<4x1xf32> to vector<4x32xf32>
    %45 = arith.addf %42, %44 : vector<4x32xf32>
    %cst_17 = arith.constant dense<0.000000e+00> : vector<4xf32>
    %46 = vector.multi_reduction <add>, %45, %cst_17 [1] : vector<4x32xf32> to vector<4xf32>
    %47 = vector.shape_cast %46 : vector<4xf32> to vector<4x1xf32>
    %48 = arith.mulf %45, %45 : vector<4x32xf32>
    %cst_18 = arith.constant dense<0.000000e+00> : vector<4xf32>
    %49 = vector.multi_reduction <add>, %48, %cst_18 [1] : vector<4x32xf32> to vector<4xf32>
    %50 = vector.shape_cast %49 : vector<4xf32> to vector<4x1xf32>
    %cst_19 = arith.constant 3.125000e-02 : f32
    %51 = vector.broadcast %cst_19 : f32 to vector<4x1xf32>
    %52 = arith.mulf %47, %51 : vector<4x1xf32>
    %cst_20 = arith.constant 3.125000e-02 : f32
    %53 = vector.broadcast %cst_20 : f32 to vector<4x1xf32>
    %54 = arith.mulf %50, %53 : vector<4x1xf32>
    %55 = arith.mulf %52, %52 : vector<4x1xf32>
    %56 = arith.subf %54, %55 : vector<4x1xf32>
    %57 = vector.broadcast %52 : vector<4x1xf32> to vector<4x32xf32>
    %58 = arith.subf %45, %57 : vector<4x32xf32>
    %cst_21 = arith.constant 9.99999974E-6 : f32
    %59 = vector.broadcast %cst_21 : f32 to vector<4x1xf32>
    %60 = arith.addf %56, %59 : vector<4x1xf32>
    %61 = math.rsqrt %60 : vector<4x1xf32>
    %62 = vector.broadcast %61 : vector<4x1xf32> to vector<4x32xf32>
    %63 = arith.mulf %58, %62 : vector<4x32xf32>
    %c0_22 = arith.constant 0 : index
    %c0_23 = arith.constant 0 : index
    %64 = vector.load %arg6[%c0_22, %c0_23] : memref<4x1xf32, #tpu.memory_space<vmem>>, vector<4x1xf32>
    %65 = vector.broadcast %64 : vector<4x1xf32> to vector<4x32xf32>
    %66 = arith.mulf %63, %65 : vector<4x32xf32>
    %c0_24 = arith.constant 0 : index
    %c0_25 = arith.constant 0 : index
    %67 = vector.load %arg7[%c0_24, %c0_25] : memref<4x1xf32, #tpu.memory_space<vmem>>, vector<4x1xf32>
    %68 = vector.broadcast %67 : vector<4x1xf32> to vector<4x32xf32>
    %69 = arith.addf %66, %68 : vector<4x32xf32>
    %cst_26 = arith.constant 0.000000e+00 : f32
    %70 = vector.broadcast %cst_26 : f32 to vector<4x32xf32>
    %71 = arith.maximumf %69, %70 : vector<4x32xf32>
    %c0_27 = arith.constant 0 : index
    %c0_28 = arith.constant 0 : index
    %72 = vector.load %arg8[%c0_27, %c0_28] : memref<8x4xf32, #tpu.memory_space<vmem>>, vector<8x4xf32>
    %cst_29 = arith.constant dense<0.000000e+00> : vector<8x32xf32>
    %73 = tpu.matmul %72, %71, %cst_29 {dimension_numbers = #tpu.dot_dimension_numbers<[1], [0], [0], [1], [0, 0, 1, 1], [], []>} : vector<8x4xf32>, vector<4x32xf32>, vector<8x32xf32> -> vector<8x32xf32>
    %c0_30 = arith.constant 0 : index
    %c0_31 = arith.constant 0 : index
    %74 = vector.load %arg9[%c0_30, %c0_31] : memref<8x1xf32, #tpu.memory_space<vmem>>, vector<8x1xf32>
    %75 = vector.broadcast %74 : vector<8x1xf32> to vector<8x32xf32>
    %76 = arith.addf %73, %75 : vector<8x32xf32>
    %77 = arith.addf %0, %76 : vector<8x32xf32>
    %c0_32 = arith.constant 0 : index
    %c0_33 = arith.constant 0 : index
    %78 = vector.load %arg10[%c0_32, %c0_33] : memref<8x32xf32, #tpu.memory_space<vmem>>, vector<8x32xf32>
    tpu.vector_store %arg10[%c0_32, %c0_33], %77 {strides = array<i32>} : memref<8x32xf32, #tpu.memory_space<vmem>>, vector<8x32xf32>,
    return
  }
}

</mosaic_0001>

<bundles_post_ra>
// kernel: tpu_custom_call.1
= control target key start
LH: loop header
LB: loop body
LE: loop exit
PB: predicated region body
PF: predicated region fallthrough
CT: control target
= control target key end

     0   :  { %vm37_vm0 = vcmask 261120   ;;  %v368_v4 = vmov 0   ;;  %s474_s0 = inlined_call_operand.vmem [shape: f32[8,32], index: 0, kind: input, shape index: {}]   ;;  %s475_s1 = inlined_call_operand.vmem [shape: f32[3,32], index: 1, kind: input, shape index: {}]   ;;  %s476_s2 = inlined_call_operand.vmem [shape: f32[8,1], index: 2, kind: input, shape index: {}]   ;;  %s477_s3 = inlined_call_operand.vmem [shape: f32[8,1], index: 3, kind: input, shape index: {}]   ;;  %s478_s4 = inlined_call_operand.vmem [shape: f32[4,24], index: 4, kind: input, shape index: {}]   ;;  %s479_s5 = inlined_call_operand.vmem [shape: f32[4,1], index: 5, kind: input, shape index: {}]   ;;  %s480_s6 = inlined_call_operand.vmem [shape: f32[4,1], index: 6, kind: input, shape index: {}]   ;;  %s481_s7 = inlined_call_operand.vmem [shape: f32[4,1], index: 7, kind: input, shape index: {}]   ;;  %s482_s8 = inlined_call_operand.vmem [shape: f32[8,4], index: 8, kind: input, shape index: {}]   ;;  %s483_s9 = inlined_call_operand.vmem [shape: f32[8,1], index: 9, kind: input, shape index: {}]   ;;  %s484_s10 = inlined_call_operand.hbm [shape: f32[8,32], index: 10, kind: output, shape index: {}]  }
   0x1   :  { %v434_v0 = vld [vmem:[%s474_s0] sm:$0xff]  ;;  %340 = vset.pattern.permute.xlu1 %v368_v4  ;;  %341 = vset.pattern.permute.xlu0 %v368_v4 }
   0x2   :  { %v53_v1 = vld [vmem:[%s476_s2] sm:$0xff]  ;;  %v38_v2 = vsel %vm37_vm0, %v434_v0, 0.0  ;;  %v41_v3 = vmul.f32 %v434_v0, %v434_v0 }
   0x3   :  { %15 = vsyncpa [#allocation3], 0  ;;  %39 = vadd.xlane.f32.xlu0 %v38_v2  ;;  %56 = vperm.xlu1 %340, %v53_v1   ;;  %v60_v6 = vld [vmem:[%s477_s3] sm:$0xff]  ;;  %v369_v14 = vmov 0.0   ;;  %vm370_vm1 = vmmov 0   ;;  %s371_s2 = smov 30   ;;  %v78_v24 = vlaneseq }
   0x4   :  { %v42_v5 = vsel %vm37_vm0, %v41_v3, 0.0  ;;  %318 = vmatprep.subr.mxu0 %v369_v14  ;;  %327 = vmatprep.subr.mxu1 %v369_v14  ;;  %s372_s3 = smov 126   ;;  %s373_s18 = smov 98   ;;  %v97_v23 = vld [vmem:[%s479_s5] sm:$0xf]  ;;  %vm89_vm2 = vcmask 244736  }
   0x5   :  { %324 = vmatprep.mubr.msk.f32.mxu0 %vm370_vm1, %v369_v14  ;;  %329 = vmatprep.mubr.msk.f32.mxu1 %vm370_vm1, %v369_v14  ;;  %s374_s19 = smov 2   ;;  %v79_v25 = vshrl.u32 %v78_v24, 7  ;;  %v68_v27 = vld [vmem:[%s475_s1] sm:$0x7]  ;;  %vm76_vm3 = vcmask 15360   ;;  %vm103_vm4 = vcmask 195584  }
   0x6   :  { %v96_v39 = vld [vmem:[%s478_s4] sm:$0xf]  ;;  %vm177_vm5 = vcmask 257024   ;;  %vm219_vm6 = vcmask 1043456   ;;  %vm215_vm7 = vcmask 31744  }
   0x7   :  { %43 = vadd.xlane.f32.xlu0 %v42_v5  ;;  %63 = vperm.xlu1 %340, %v60_v6   ;;  %v93_v26 = vsub.s32 2, %v79_v25  ;;  %v80_v33 = vsub.s32 0, %v79_v25  ;;  %v193_v47 = vld [vmem:[%s480_s6] sm:$0xf] }
   0x8   :  { %v209_v48 = vld [vmem:[%s483_s9] sm:$0xff]  ;;  %s375_s9 = smov [#allocation2]  }
   0x9   :  { %v94_v28 = vrot.slane %v68_v27, %v93_v26  ;;  %v81_v35 = vrot.slane %v68_v27, %v80_v33  ;;  %v200_v49 = vld [vmem:[%s481_s7] sm:$0xf]  ;;  %s301_s29 = sshll.u32 %s375_s9, 4  ;;  %s302_s29 = int_to_ptr.vmem [resolvable:$true] %s301_s29 }
   0xa   :  { %v208_v2 = vld [vmem:[%s482_s8] sm:$0xff]  ;;  %s346_s30 = scalar_lea.vmem %s302_s29, 128  ;;  %p351_p1 = scmp.lt.s32.totalorder %s302_s29, %s302_s29 }
   0xb   :  { %p347_p0 = scmp.ne.s32.totalorder %s302_s29, %s346_s30  ;;  %p352_p2 = scmp.lt.s32.totalorder %s346_s30, %s346_s30 }
   0xd   :  { %p353_p3 = por %p352_p2, %p351_p1 }
   0xf   :  { %p354_p4 = pnand %p353_p3, %p347_p0 }
  0x7e   :  { %v57_v15 = vpop.permute.xlu1 %56 }
  0x82   :  { %v64_v20 = vpop.permute.xlu1 %63 }
  0x8c   :  { %v40_v7 = vpop.xlane.xlu0 %39 }
  0x8d   :  { %v45_v8 = vmul.f32 0.03125, %v40_v7 }
  0x8f   :  { %v47_v10 = vmul.f32 %v45_v8, %v45_v8  ;;  %v49_v16 = vsub.f32 %v434_v0, %v45_v8 }
  0x90   :  { %v44_v9 = vpop.xlane.xlu0 %43 }
  0x91   :  { %v46_v11 = vmul.f32 0.03125, %v44_v9 }
  0x93   :  { %v48_v12 = vsub.f32 %v46_v11, %v47_v10 }
  0x95   :  { %v50_v13 = vadd.f32 1e-05, %v48_v12 }
  0x97   :  { %342 = vrsqrt.f32 %v50_v13 }
  0xa4   :  { %v343_v17 = vpop.eup %342 }
  0xa5   :  { %v52_v18 = vmul.f32 %v343_v17, %v49_v16 }
  0xa7   :  { %v59_v19 = vmul.f32 %v57_v15, %v52_v18 }
  0xa9   :  { %v66_v21 = vadd.f32 %v64_v20, %v59_v19 }
  0xab   :  { %v67_v22 = vmax.f32 %v66_v21, 0.0 }
  0xad   :  { %86 = vrot.lane.b32.xlu1 %v67_v22, %s371_s2  ;;  %83 = vrot.lane.b32.xlu0 %v67_v22, %s372_s3 }
  0xb1   :  { %70 = vrot.lane.b32.xlu1 %v67_v22, %s373_s18 }
  0xb5   :  { %73 = vrot.lane.b32.xlu1 %v67_v22, %s374_s19 }
  0xb9   :  { %100 = vperm.xlu1 %340, %v97_v23  }
 0x11f   :  { %v87_v29 = vpop.permute.xlu1 %86  ;;  %v84_v30 = vpop.permute.xlu0 %83 }
 0x120   :  { %v90_v31 = vsel %vm89_vm2, %v84_v30, %v87_v29 }
 0x121   :  { %v95_v32 = vmul.f32 %v94_v28, %v90_v31 }
 0x123   :  { %v71_v34 = vpop.permute.xlu1 %70  ;;  %319 = vmatpush3.msra.mxu0 %v95_v32 }
 0x124   :  { %320 = vmatprep.subr.mxu0 %v369_v14 }
 0x125   :  { %321 = vmatpush3.msra.mxu0 %v67_v22 }
 0x126   :  { %322 = vmatprep.subr.mxu0 %v369_v14 }
 0x127   :  { %v74_v36 = vpop.permute.xlu1 %73 }
 0x128   :  { %v77_v37 = vsel %vm76_vm3, %v71_v34, %v74_v36 }
 0x129   :  { %v82_v38 = vmul.f32 %v81_v35, %v77_v37 }
 0x12b   :  { %323 = vmatpush3.msra.mxu0 %v82_v38 }
 0x12c   :  { %325 = vmatmul.mubr.msk.f32.vlgmr.msra.gmra.mxu0 %vm103_vm4, %v96_v39 }
 0x134   :  { %v101_v40 = vpop.permute.xlu1 %100 }
 0x1ec   :  { %v173_v41 = vpop.f32.mrf.mxu0 }
 0x1ed   :  { %v174_v42 = vadd.f32 %v173_v41, %v101_v40 }
 0x1ee   :  { %v326_v43 = vpop.f32.mrf.mxu0 }
 0x1ef   :  { %v178_v44 = vsel %vm177_vm5, %v174_v42, 0.0  ;;  %v181_v45 = vmul.f32 %v174_v42, %v174_v42 }
 0x1f0   :  { %179 = vadd.xlane.f32.xlu1 %v178_v44 }
 0x1f1   :  { %v182_v46 = vsel %vm177_vm5, %v181_v45, 0.0 }
 0x1f2   :  { %183 = vadd.xlane.f32.xlu0 %v182_v46 }
 0x201   :  { %196 = vperm.xlu1 %340, %v193_v47  }
 0x205   :  { %212 = vperm.xlu1 %340, %v209_v48  }
 0x208   :  { %203 = vperm.xlu0 %341, %v200_v49  }
 0x279   :  { %v180_v50 = vpop.xlane.xlu1 %179 }
 0x27a   :  { %v185_v51 = vmul.f32 0.03125, %v180_v50 }
 0x27b   :  { %v184_v52 = vpop.xlane.xlu0 %183 }
 0x27c   :  { %v187_v53 = vmul.f32 %v185_v51, %v185_v51  ;;  %v186_v54 = vmul.f32 0.03125, %v184_v52  ;;  %v189_v57 = vsub.f32 %v174_v42, %v185_v51 }
 0x27d   :  { %v197_v60 = vpop.permute.xlu1 %196 }
 0x27e   :  { %v188_v55 = vsub.f32 %v186_v54, %v187_v53 }
 0x280   :  { %v190_v56 = vadd.f32 1e-05, %v188_v55 }
 0x281   :  { %v213_v3 = vpop.permute.xlu1 %212 }
 0x282   :  { %344 = vrsqrt.f32 %v190_v56 }
 0x283   :  { %v204_v61 = vpop.permute.xlu0 %203 }
 0x28f   :  { %v345_v58 = vpop.eup %344 }
 0x290   :  { %v192_v59 = vmul.f32 %v345_v58, %v189_v57 }
 0x292   :  { %v199_v62 = vmul.f32 %v197_v60, %v192_v59 }
 0x294   :  { %v206_v63 = vadd.f32 %v204_v61, %v199_v62 }
 0x296   :  { %v207_v1 = vmax.f32 %v206_v63, 0.0 }
 0x298   :  { %328 = vmatpush3.msk.msra.mxu1 %vm219_vm6, %v207_v1 }
 0x299   :  { %330 = vmatmul.mubr.msk.f32.vlgmr.msra.gmra.mxu1 %vm215_vm7, %v208_v2 }
 0x359   :  { %v289_v4 = vpop.f32.mrf.mxu1 }
 0x35a   :  { %v290_v5 = vadd.f32 %v289_v4, %v213_v3 }
 0x35b   :  { %v331_v6 = vpop.f32.mrf.mxu1 }
 0x35c   :  { %v293_v7 = vadd.f32 %v290_v5, %v434_v0 }
 0x35e   :  { %294 = vst.msk [vmem:[#allocation2] sm:$0xff] %vm37_vm0, %v293_v7 }
 0x35f   :  { %357 = shalt.err (!%p354_p4)
}
 0x360   :  { %304 = dma.vmem_to_hbm [thread:$0]  %s302_s29, 128, %s484_s10, [#allocation3]  }
 0x361   :  { %366 = dma.done.wait [#allocation3], 128  }
 0x362   :  { %367 = vsyncadd [#allocation3], 4294967168 }
 0x363   :  { %308 = vsyncpa [#allocation3], 1 }

</bundles_post_ra>
